<compile_context>
chip_gen: v5e
topology: v5e:2x2
jax: 0.10.0
libtpu: 0.0.40
codegen_flags: <defaults>
</compile_context>

<pallas_src>
import jax
import jax.numpy as jnp
import numpy as np
from jax.experimental import pallas as pl
from jax.experimental.pallas import tpu as pltpu


def attention_kernel(enc_ref, dec_ref, mask_ref,
                     w1t_ref, b1_ref, w2t_ref, b2_ref, w3_ref,
                     attn_ref, probs_ref):
    tb, ninp, enc_size = enc_ref.shape
    hid = w1t_ref.shape[1]

    enc = enc_ref[...]            # [TILE_B, NINP, ENC]
    dec = dec_ref[...]            # [TILE_B, DEC]
    mask = mask_ref[...]          # [TILE_B, NINP]

    # linear2(dec) -> [TILE_B, HID]   (MXU, weights pre-transposed)
    tmp = jnp.dot(dec, w2t_ref[...],
                  preferred_element_type=jnp.float32) + b2_ref[...]

    # linear1(enc): one (TILE_B*NINP, ENC) x (ENC, HID) MXU matmul
    x = jnp.dot(enc.reshape(tb * ninp, enc_size), w1t_ref[...],
                preferred_element_type=jnp.float32) + b1_ref[...]
    x = x.reshape(tb, ninp, hid)

    # activ(linear1(enc) + linear2(dec))   (f32 VPU/EUP)
    x = jnp.tanh(x + tmp[:, None, :])           # [TILE_B, NINP, HID]

    # linear3: VPU multiply + lane reduce over HID (no transpose, no MXU).
    # b3 is intentionally omitted: a constant added to every score cancels
    # under softmax.
    scores = jnp.sum(x * w3_ref[...], axis=-1)  # [TILE_B, NINP]

    # masked positions get -1e9 (matches x[inp_mask == False] = -1e9)
    scores = jnp.where(mask == 0.0, jnp.float32(-1.0e9), scores)

    # softmax over NINP (f32)
    m = jnp.max(scores, axis=-1, keepdims=True)
    e = jnp.exp(scores - m)
    probs = e / jnp.sum(e, axis=-1, keepdims=True)
    probs_ref[...] = probs.astype(probs_ref.dtype)

    # attn = sum_n probs[:, n] * enc[:, n, :]  -> [TILE_B, ENC]
    # NINP is small & static here, so an unrolled VPU multiply-add avoids any
    # cross-sublane reduction or batched tiny matmul.
    # TODO(synk): for large NINP switch this to a single reduction/matmul.
    attn = probs[:, 0:1] * enc[:, 0, :].astype(jnp.float32)
    for n in range(1, ninp):
        attn = attn + probs[:, n:n + 1] * enc[:, n, :].astype(jnp.float32)
    attn_ref[...] = attn.astype(attn_ref.dtype)


def attention_layer(enc, dec, inp_mask, params, *, tile_b=256,
                    compute_dtype=jnp.float32):
    """Additive-attention forward via Pallas. params: dict w1,b1,w2,b2,w3,b3.

    tile_b: batch rows processed per grid step (amortizes per-step overhead;
            rounded down to a multiple of 8 when tiling).
    compute_dtype: dtype of the MXU matmul operands (use jnp.bfloat16 on
            v6e/v7x for peak MXU rate); tanh/softmax always run in float32.
    """
    B, NINP, ENC = enc.shape
    DEC = dec.shape[1]
    HID = params["w1"].shape[0]

    # Pre-transpose weights once in the wrapper (free in XLA) so the kernel
    # never re-executes a transpose per grid step.
    w1t = params["w1"].T.astype(compute_dtype)          # [ENC, HID]
    w2t = params["w2"].T.astype(compute_dtype)          # [DEC, HID]
    b1 = params["b1"].reshape(1, HID).astype(jnp.float32)
    b2 = params["b2"].reshape(1, HID).astype(jnp.float32)
    w3 = params["w3"].reshape(1, HID).astype(jnp.float32)
    # b3 is not passed: it cancels under softmax.

    enc_c = enc.astype(compute_dtype)
    dec_c = dec.astype(compute_dtype)
    mask = inp_mask.astype(jnp.float32)

    # Batch tiling: TILE_B rows per grid step; pad B up to a multiple of it.
    if tile_b >= B:
        TILE_B = B
    else:
        TILE_B = max(8, (tile_b // 8) * 8)
    padded_B = pl.cdiv(B, TILE_B) * TILE_B
    if padded_B != B:
        pad = padded_B - B
        enc_c = jnp.pad(enc_c, ((0, pad), (0, 0), (0, 0)))
        dec_c = jnp.pad(dec_c, ((0, pad), (0, 0)))
        mask = jnp.pad(mask, ((0, pad), (0, 0)))   # padded rows fully masked

    grid = (padded_B // TILE_B,)

    attn, probs = pl.pallas_call(
        attention_kernel,
        out_shape=(jax.ShapeDtypeStruct((padded_B, ENC), jnp.float32),
                   jax.ShapeDtypeStruct((padded_B, NINP), jnp.float32)),
        grid_spec=pltpu.PrefetchScalarGridSpec(
            num_scalar_prefetch=0,
            grid=grid,
            in_specs=[
                pl.BlockSpec((TILE_B, NINP, ENC), lambda b: (b, 0, 0)),  # enc
                pl.BlockSpec((TILE_B, DEC),       lambda b: (b, 0)),     # dec
                pl.BlockSpec((TILE_B, NINP),      lambda b: (b, 0)),     # mask
                pl.BlockSpec((ENC, HID),          lambda b: (0, 0)),     # w1^T
                pl.BlockSpec((1, HID),            lambda b: (0, 0)),     # b1
                pl.BlockSpec((DEC, HID),          lambda b: (0, 0)),     # w2^T
                pl.BlockSpec((1, HID),            lambda b: (0, 0)),     # b2
                pl.BlockSpec((1, HID),            lambda b: (0, 0)),     # w3
            ],
            out_specs=[
                pl.BlockSpec((TILE_B, ENC),  lambda b: (b, 0)),          # attn
                pl.BlockSpec((TILE_B, NINP), lambda b: (b, 0)),          # probs
            ],
        ),
        compiler_params=pltpu.CompilerParams(
            dimension_semantics=("parallel",)),
    )(enc_c, dec_c, mask, w1t, b1, w2t, b2, w3)

    if padded_B != B:
        attn = attn[:B]
        probs = probs[:B]
    return attn, probs


def reference(enc, dec, inp_mask, params):
    """Pure-JAX reference mirroring the PyTorch forward (includes b3)."""
    tmp = dec @ params["w2"].T + params["b2"]                 # [B, HID]
    x = enc @ params["w1"].T + params["b1"]                   # [B, NINP, HID]
    x = jnp.tanh(x + tmp[:, None, :])
    scores = (x @ params["w3"].T + params["b3"])[..., 0]      # [B, NINP]
    scores = jnp.where(inp_mask == 0.0, -1.0e9, scores)
    probs = jax.nn.softmax(scores, axis=-1)
    attn = jnp.sum(probs[..., None] * enc, axis=1)
    return attn, probs


if __name__ == "__main__":
    key = jax.random.PRNGKey(0)
    ks = jax.random.split(key, 12)

    NINP, ENC, DEC, HID = 8, 16, 12, 32

    def uinit(k, shape, fan_in):
        bound = 1.0 / np.sqrt(fan_in)
        return jax.random.uniform(k, shape, jnp.float32, -bound, bound)

    params = {
        "w1": uinit(ks[0], (HID, ENC), ENC),
        "b1": uinit(ks[1], (HID,), ENC),
        "w2": uinit(ks[2], (HID, DEC), DEC),
        "b2": uinit(ks[3], (HID,), DEC),
        "w3": uinit(ks[4], (1, HID), HID),
        "b3": uinit(ks[5], (1,), HID),
    }

    # --- case 1: tiny batch, whole batch in a single grid step --------------
    B = 2
    enc = jax.random.normal(ks[6], (B, NINP, ENC), jnp.float32)
    dec = jax.random.normal(ks[7], (B, DEC), jnp.float32)
    inp_mask = jnp.array(
        [[1, 1, 1, 1, 1, 0, 0, 0],
         [1, 1, 1, 1, 1, 1, 1, 0]], dtype=jnp.float32)

    attn, probs = attention_layer(enc, dec, inp_mask, params)
    attn = jax.block_until_ready(attn)
    probs = jax.block_until_ready(probs)

    attn_ref, probs_ref = reference(enc, dec, inp_mask, params)
    np.testing.assert_allclose(np.asarray(attn), np.asarray(attn_ref),
                               rtol=1e-5, atol=1e-5)
    np.testing.assert_allclose(np.asarray(probs), np.asarray(probs_ref),
                               rtol=1e-5, atol=1e-5)

    # --- case 2: exercise batch tiling + padding (B not multiple of TILE_B) -
    B2 = 20
    enc2 = jax.random.normal(ks[8], (B2, NINP, ENC), jnp.float32)
    dec2 = jax.random.normal(ks[9], (B2, DEC), jnp.float32)
    lens = jax.random.randint(ks[10], (B2,), 1, NINP + 1)
    mask2 = (jnp.arange(NINP)[None, :] < lens[:, None]).astype(jnp.float32)

    attn2, probs2 = attention_layer(enc2, dec2, mask2, params, tile_b=8)
    attn2 = jax.block_until_ready(attn2)
    probs2 = jax.block_until_ready(probs2)

    attn2_ref, probs2_ref = reference(enc2, dec2, mask2, params)
    np.testing.assert_allclose(np.asarray(attn2), np.asarray(attn2_ref),
                               rtol=1e-5, atol=1e-5)
    np.testing.assert_allclose(np.asarray(probs2), np.asarray(probs2_ref),
                               rtol=1e-5, atol=1e-5)

    print("KERNEL_OK")
</pallas_src>

<mosaic_0001>
module attributes {stable_mosaic.version = 11 : i64} {
  func.func @attention_kernel(%arg0: i32, %arg1: memref<2x8x16xf32, #tpu.memory_space<vmem>>, %arg2: memref<2x12xf32, #tpu.memory_space<vmem>>, %arg3: memref<2x8xf32, #tpu.memory_space<vmem>>, %arg4: memref<16x32xf32, #tpu.memory_space<vmem>>, %arg5: memref<1x32xf32, #tpu.memory_space<vmem>>, %arg6: memref<12x32xf32, #tpu.memory_space<vmem>>, %arg7: memref<1x32xf32, #tpu.memory_space<vmem>>, %arg8: memref<1x32xf32, #tpu.memory_space<vmem>>, %arg9: memref<2x16xf32, #tpu.memory_space<vmem>>, %arg10: memref<2x8xf32, #tpu.memory_space<vmem>>) attributes {dimension_semantics = [#tpu.dimension_semantics<parallel>], iteration_bounds = array<i64: 1>, scalar_prefetch = 0 : i64, scratch_operands = 0 : i64, tpu.core_type = #tpu.core_type<tc>, window_params = [{transform_indices = @transform_0, window_bounds = array<i64: 2, 8, 16>}, {transform_indices = @transform_1, window_bounds = array<i64: 2, 12>}, {transform_indices = @transform_2, window_bounds = array<i64: 2, 8>}, {pipeline_mode = #tpu.pipeline_mode<synchronous>, transform_indices = @transform_3, window_bounds = array<i64: 16, 32>}, {pipeline_mode = #tpu.pipeline_mode<synchronous>, transform_indices = @transform_4, window_bounds = array<i64: 1, 32>}, {pipeline_mode = #tpu.pipeline_mode<synchronous>, transform_indices = @transform_5, window_bounds = array<i64: 12, 32>}, {pipeline_mode = #tpu.pipeline_mode<synchronous>, transform_indices = @transform_6, window_bounds = array<i64: 1, 32>}, {pipeline_mode = #tpu.pipeline_mode<synchronous>, transform_indices = @transform_7, window_bounds = array<i64: 1, 32>}, {transform_indices = @transform_8, window_bounds = array<i64: 2, 16>}, {transform_indices = @transform_9, window_bounds = array<i64: 2, 8>}]} {
    %c0 = arith.constant 0 : index
    %c0_0 = arith.constant 0 : index
    %c0_1 = arith.constant 0 : index
    %0 = vector.load %arg1[%c0, %c0_0, %c0_1] : memref<2x8x16xf32, #tpu.memory_space<vmem>>, vector<2x8x16xf32>
    %c0_2 = arith.constant 0 : index
    %c0_3 = arith.constant 0 : index
    %1 = vector.load %arg2[%c0_2, %c0_3] : memref<2x12xf32, #tpu.memory_space<vmem>>, vector<2x12xf32>
    %c0_4 = arith.constant 0 : index
    %c0_5 = arith.constant 0 : index
    %2 = vector.load %arg3[%c0_4, %c0_5] : memref<2x8xf32, #tpu.memory_space<vmem>>, vector<2x8xf32>
    %c0_6 = arith.constant 0 : index
    %c0_7 = arith.constant 0 : index
    %3 = vector.load %arg6[%c0_6, %c0_7] : memref<12x32xf32, #tpu.memory_space<vmem>>, vector<12x32xf32>
    %cst = arith.constant dense<0.000000e+00> : vector<2x32xf32>
    %4 = tpu.matmul %1, %3, %cst {dimension_numbers = #tpu.dot_dimension_numbers<[1], [0], [0], [1], [0, 0, 1, 1], [], []>} : vector<2x12xf32>, vector<12x32xf32>, vector<2x32xf32> -> vector<2x32xf32>
    %c0_8 = arith.constant 0 : index
    %c0_9 = arith.constant 0 : index
    %5 = vector.load %arg7[%c0_8, %c0_9] : memref<1x32xf32, #tpu.memory_space<vmem>>, vector<1x32xf32>
    %6 = vector.broadcast %5 : vector<1x32xf32> to vector<2x32xf32>
    %7 = arith.addf %4, %6 : vector<2x32xf32>
    %8 = vector.shape_cast %0 : vector<2x8x16xf32> to vector<16x16xf32>
    %c0_10 = arith.constant 0 : index
    %c0_11 = arith.constant 0 : index
    %9 = vector.load %arg4[%c0_10, %c0_11] : memref<16x32xf32, #tpu.memory_space<vmem>>, vector<16x32xf32>
    %cst_12 = arith.constant dense<0.000000e+00> : vector<16x32xf32>
    %10 = tpu.matmul %8, %9, %cst_12 {dimension_numbers = #tpu.dot_dimension_numbers<[1], [0], [0], [1], [0, 0, 1, 1], [], []>} : vector<16x16xf32>, vector<16x32xf32>, vector<16x32xf32> -> vector<16x32xf32>
    %c0_13 = arith.constant 0 : index
    %c0_14 = arith.constant 0 : index
    %11 = vector.load %arg5[%c0_13, %c0_14] : memref<1x32xf32, #tpu.memory_space<vmem>>, vector<1x32xf32>
    %12 = vector.broadcast %11 : vector<1x32xf32> to vector<16x32xf32>
    %13 = arith.addf %10, %12 : vector<16x32xf32>
    %14 = vector.shape_cast %13 : vector<16x32xf32> to vector<2x8x32xf32>
    %15 = vector.shape_cast %7 : vector<2x32xf32> to vector<2x1x32xf32>
    %16 = vector.broadcast %15 : vector<2x1x32xf32> to vector<2x8x32xf32>
    %17 = arith.addf %14, %16 : vector<2x8x32xf32>
    %18 = math.tanh %17 : vector<2x8x32xf32>
    %c0_15 = arith.constant 0 : index
    %c0_16 = arith.constant 0 : index
    %19 = vector.load %arg8[%c0_15, %c0_16] : memref<1x32xf32, #tpu.memory_space<vmem>>, vector<1x32xf32>
    %20 = vector.shape_cast %19 : vector<1x32xf32> to vector<1x1x32xf32>
    %21 = vector.broadcast %20 : vector<1x1x32xf32> to vector<2x8x32xf32>
    %22 = arith.mulf %18, %21 : vector<2x8x32xf32>
    %cst_17 = arith.constant dense<0.000000e+00> : vector<2x8xf32>
    %23 = vector.multi_reduction <add>, %22, %cst_17 [2] : vector<2x8x32xf32> to vector<2x8xf32>
    %cst_18 = arith.constant 0.000000e+00 : f32
    %24 = vector.broadcast %cst_18 : f32 to vector<2x8xf32>
    %25 = arith.cmpf oeq, %2, %24 : vector<2x8xf32>
    %cst_19 = arith.constant -1.000000e+09 : f32
    %26 = vector.broadcast %cst_19 : f32 to vector<2x8xf32>
    %27 = arith.select %25, %26, %23 : vector<2x8xi1>, vector<2x8xf32>
    %cst_20 = arith.constant dense<0xFF800000> : vector<2xf32>
    %28 = vector.multi_reduction <maximumf>, %27, %cst_20 [1] : vector<2x8xf32> to vector<2xf32>
    %29 = vector.shape_cast %28 : vector<2xf32> to vector<2x1xf32>
    %30 = vector.broadcast %29 : vector<2x1xf32> to vector<2x8xf32>
    %31 = arith.subf %27, %30 : vector<2x8xf32>
    %32 = math.exp %31 : vector<2x8xf32>
    %cst_21 = arith.constant dense<0.000000e+00> : vector<2xf32>
    %33 = vector.multi_reduction <add>, %32, %cst_21 [1] : vector<2x8xf32> to vector<2xf32>
    %34 = vector.shape_cast %33 : vector<2xf32> to vector<2x1xf32>
    %35 = vector.broadcast %34 : vector<2x1xf32> to vector<2x8xf32>
    %36 = arith.divf %32, %35 : vector<2x8xf32>
    %c0_22 = arith.constant 0 : index
    %c0_23 = arith.constant 0 : index
    %37 = vector.load %arg10[%c0_22, %c0_23] : memref<2x8xf32, #tpu.memory_space<vmem>>, vector<2x8xf32>
    tpu.vector_store %arg10[%c0_22, %c0_23], %36 {strides = array<i32>} : memref<2x8xf32, #tpu.memory_space<vmem>>, vector<2x8xf32>,
    %38 = vector.extract_strided_slice %36 {offsets = [0, 0], sizes = [2, 1], strides = [1, 1]} : vector<2x8xf32> to vector<2x1xf32>
    %39 = vector.extract_strided_slice %0 {offsets = [0, 0, 0], sizes = [2, 1, 16], strides = [1, 1, 1]} : vector<2x8x16xf32> to vector<2x1x16xf32>
    %40 = vector.shape_cast %39 : vector<2x1x16xf32> to vector<2x16xf32>
    %41 = vector.broadcast %38 : vector<2x1xf32> to vector<2x16xf32>
    %42 = arith.mulf %41, %40 : vector<2x16xf32>
    %43 = vector.extract_strided_slice %36 {offsets = [0, 1], sizes = [2, 1], strides = [1, 1]} : vector<2x8xf32> to vector<2x1xf32>
    %44 = vector.extract_strided_slice %0 {offsets = [0, 1, 0], sizes = [2, 1, 16], strides = [1, 1, 1]} : vector<2x8x16xf32> to vector<2x1x16xf32>
    %45 = vector.shape_cast %44 : vector<2x1x16xf32> to vector<2x16xf32>
    %46 = vector.broadcast %43 : vector<2x1xf32> to vector<2x16xf32>
    %47 = arith.mulf %46, %45 : vector<2x16xf32>
    %48 = arith.addf %42, %47 : vector<2x16xf32>
    %49 = vector.extract_strided_slice %36 {offsets = [0, 2], sizes = [2, 1], strides = [1, 1]} : vector<2x8xf32> to vector<2x1xf32>
    %50 = vector.extract_strided_slice %0 {offsets = [0, 2, 0], sizes = [2, 1, 16], strides = [1, 1, 1]} : vector<2x8x16xf32> to vector<2x1x16xf32>
    %51 = vector.shape_cast %50 : vector<2x1x16xf32> to vector<2x16xf32>
    %52 = vector.broadcast %49 : vector<2x1xf32> to vector<2x16xf32>
    %53 = arith.mulf %52, %51 : vector<2x16xf32>
    %54 = arith.addf %48, %53 : vector<2x16xf32>
    %55 = vector.extract_strided_slice %36 {offsets = [0, 3], sizes = [2, 1], strides = [1, 1]} : vector<2x8xf32> to vector<2x1xf32>
    %56 = vector.extract_strided_slice %0 {offsets = [0, 3, 0], sizes = [2, 1, 16], strides = [1, 1, 1]} : vector<2x8x16xf32> to vector<2x1x16xf32>
    %57 = vector.shape_cast %56 : vector<2x1x16xf32> to vector<2x16xf32>
    %58 = vector.broadcast %55 : vector<2x1xf32> to vector<2x16xf32>
    %59 = arith.mulf %58, %57 : vector<2x16xf32>
    %60 = arith.addf %54, %59 : vector<2x16xf32>
    %61 = vector.extract_strided_slice %36 {offsets = [0, 4], sizes = [2, 1], strides = [1, 1]} : vector<2x8xf32> to vector<2x1xf32>
    %62 = vector.extract_strided_slice %0 {offsets = [0, 4, 0], sizes = [2, 1, 16], strides = [1, 1, 1]} : vector<2x8x16xf32> to vector<2x1x16xf32>
    %63 = vector.shape_cast %62 : vector<2x1x16xf32> to vector<2x16xf32>
    %64 = vector.broadcast %61 : vector<2x1xf32> to vector<2x16xf32>
    %65 = arith.mulf %64, %63 : vector<2x16xf32>
    %66 = arith.addf %60, %65 : vector<2x16xf32>
    %67 = vector.extract_strided_slice %36 {offsets = [0, 5], sizes = [2, 1], strides = [1, 1]} : vector<2x8xf32> to vector<2x1xf32>
    %68 = vector.extract_strided_slice %0 {offsets = [0, 5, 0], sizes = [2, 1, 16], strides = [1, 1, 1]} : vector<2x8x16xf32> to vector<2x1x16xf32>
    %69 = vector.shape_cast %68 : vector<2x1x16xf32> to vector<2x16xf32>
    %70 = vector.broadcast %67 : vector<2x1xf32> to vector<2x16xf32>
    %71 = arith.mulf %70, %69 : vector<2x16xf32>
    %72 = arith.addf %66, %71 : vector<2x16xf32>
    %73 = vector.extract_strided_slice %36 {offsets = [0, 6], sizes = [2, 1], strides = [1, 1]} : vector<2x8xf32> to vector<2x1xf32>
    %74 = vector.extract_strided_slice %0 {offsets = [0, 6, 0], sizes = [2, 1, 16], strides = [1, 1, 1]} : vector<2x8x16xf32> to vector<2x1x16xf32>
    %75 = vector.shape_cast %74 : vector<2x1x16xf32> to vector<2x16xf32>
    %76 = vector.broadcast %73 : vector<2x1xf32> to vector<2x16xf32>
    %77 = arith.mulf %76, %75 : vector<2x16xf32>
    %78 = arith.addf %72, %77 : vector<2x16xf32>
    %79 = vector.extract_strided_slice %36 {offsets = [0, 7], sizes = [2, 1], strides = [1, 1]} : vector<2x8xf32> to vector<2x1xf32>
    %80 = vector.extract_strided_slice %0 {offsets = [0, 7, 0], sizes = [2, 1, 16], strides = [1, 1, 1]} : vector<2x8x16xf32> to vector<2x1x16xf32>
    %81 = vector.shape_cast %80 : vector<2x1x16xf32> to vector<2x16xf32>
    %82 = vector.broadcast %79 : vector<2x1xf32> to vector<2x16xf32>
    %83 = arith.mulf %82, %81 : vector<2x16xf32>
    %84 = arith.addf %78, %83 : vector<2x16xf32>
    %c0_24 = arith.constant 0 : index
    %c0_25 = arith.constant 0 : index
    %85 = vector.load %arg9[%c0_24, %c0_25] : memref<2x16xf32, #tpu.memory_space<vmem>>, vector<2x16xf32>
    tpu.vector_store %arg9[%c0_24, %c0_25], %84 {strides = array<i32>} : memref<2x16xf32, #tpu.memory_space<vmem>>, vector<2x16xf32>,
    return
  }
  func.func @transform_0(%arg0: i32) -> (i32, i32, i32) {
    %c0_i32 = arith.constant 0 : i32
    %c0_i32_0 = arith.constant 0 : i32
    %c0_i32_1 = arith.constant 0 : i32
    return %arg0, %c0_i32, %c0_i32_0 : i32, i32, i32
  }
  func.func @transform_1(%arg0: i32) -> (i32, i32) {
    %c0_i32 = arith.constant 0 : i32
    %c0_i32_0 = arith.constant 0 : i32
    return %arg0, %c0_i32 : i32, i32
  }
  func.func @transform_2(%arg0: i32) -> (i32, i32) {
    %c0_i32 = arith.constant 0 : i32
    %c0_i32_0 = arith.constant 0 : i32
    return %arg0, %c0_i32 : i32, i32
  }
  func.func @transform_3(%arg0: i32) -> (i32, i32) {
    %c0_i32 = arith.constant 0 : i32
    %c0_i32_0 = arith.constant 0 : i32
    %c0_i32_1 = arith.constant 0 : i32
    return %c0_i32, %c0_i32_0 : i32, i32
  }
  func.func @transform_4(%arg0: i32) -> (i32, i32) {
    %c0_i32 = arith.constant 0 : i32
    %c0_i32_0 = arith.constant 0 : i32
    %c0_i32_1 = arith.constant 0 : i32
    return %c0_i32, %c0_i32_0 : i32, i32
  }
  func.func @transform_5(%arg0: i32) -> (i32, i32) {
    %c0_i32 = arith.constant 0 : i32
    %c0_i32_0 = arith.constant 0 : i32
    %c0_i32_1 = arith.constant 0 : i32
    return %c0_i32, %c0_i32_0 : i32, i32
  }
  func.func @transform_6(%arg0: i32) -> (i32, i32) {
    %c0_i32 = arith.constant 0 : i32
    %c0_i32_0 = arith.constant 0 : i32
    %c0_i32_1 = arith.constant 0 : i32
    return %c0_i32, %c0_i32_0 : i32, i32
  }
  func.func @transform_7(%arg0: i32) -> (i32, i32) {
    %c0_i32 = arith.constant 0 : i32
    %c0_i32_0 = arith.constant 0 : i32
    %c0_i32_1 = arith.constant 0 : i32
    return %c0_i32, %c0_i32_0 : i32, i32
  }
  func.func @transform_8(%arg0: i32) -> (i32, i32) {
    %c0_i32 = arith.constant 0 : i32
    %c0_i32_0 = arith.constant 0 : i32
    return %arg0, %c0_i32 : i32, i32
  }
  func.func @transform_9(%arg0: i32) -> (i32, i32) {
    %c0_i32 = arith.constant 0 : i32
    %c0_i32_0 = arith.constant 0 : i32
    return %arg0, %c0_i32 : i32, i32
  }
}

</mosaic_0001>

<bundles_post_ra>
// kernel: tpu_custom_call.1
= control target key start
LH: loop header
LB: loop body
LE: loop exit
PB: predicated region body
PF: predicated region fallthrough
CT: control target
= control target key end

     0   :  { %15 = vsyncpa [#allocation3], 0  ;;  %s708_s0 = inlined_call_operand.hbm [shape: f32[2,8,16], index: 0, kind: input, shape index: {}]   ;;  %s709_s1 = inlined_call_operand.hbm [shape: f32[2,12], index: 1, kind: input, shape index: {}]   ;;  %s710_s2 = inlined_call_operand.hbm [shape: f32[2,8], index: 2, kind: input, shape index: {}]   ;;  %s711_s3 = inlined_call_operand.hbm [shape: f32[16,32], index: 3, kind: input, shape index: {}]   ;;  %s712_s4 = inlined_call_operand.vmem [shape: f32[1,32], index: 4, kind: input, shape index: {}]   ;;  %s713_s5 = inlined_call_operand.hbm [shape: f32[12,32], index: 5, kind: input, shape index: {}]   ;;  %s714_s6 = inlined_call_operand.vmem [shape: f32[1,32], index: 6, kind: input, shape index: {}]   ;;  %s715_s7 = inlined_call_operand.vmem [shape: f32[1,32], index: 7, kind: input, shape index: {}]   ;;  %s716_s8 = inlined_call_operand.hbm [shape: f32[2,16], index: 8, kind: output, shape index: {0}]   ;;  %s717_s9 = inlined_call_operand.hbm [shape: f32[2,8], index: 9, kind: output, shape index: {1}]  }
   0x1   :  { %16 = vsyncpa [#allocation6], 0 }
   0x2   :  { %17 = vsyncpa [#allocation9], 0 }
   0x3   :  { %18 = vsyncpa [#allocation4], 0  ;;  %s38_s11 = sshll.u32 %s709_s1, 4  ;;  %s39_s11 = int_to_ptr.hbm [resolvable:$true] %s38_s11 }
   0x4   :  { %19 = vsyncpa [#allocation13], 0  ;;  %s577_s12 = smov [#allocation5]   ;;  %s59_s16 = sshll.u32 %s711_s3, 4  ;;  %s60_s16 = int_to_ptr.hbm [resolvable:$true] %s59_s16 }
   0x5   :  { %s40_s13 = sshll.u32 %s577_s12, 4  ;;  %s578_s17 = smov [#allocation8]   ;;  %s41_s13 = int_to_ptr.vmem [resolvable:$true] %s40_s13 }
   0x6   :  { %43 = dma.hbm_to_vmem [thread:$0]  %s39_s11, 32, %s41_s13, [#allocation6]  }
   0x7   :  { %s61_s18 = sshll.u32 %s578_s17, 4  ;;  %s24_s21 = sshll.u32 %s708_s0, 4  ;;  %s62_s18 = int_to_ptr.vmem [resolvable:$true] %s61_s18  ;;  %s25_s21 = int_to_ptr.hbm [resolvable:$true] %s24_s21 }
   0x8   :  { %s579_s1 = smov 128   ;;  %s580_s22 = smov 8  }
   0x9   :  { %67 = dma.hbm_to_vmem [thread:$0]  %s60_s16, 256, %s62_s18, [#allocation9], %s579_s1, %s579_s1, %s580_s22  }
   0xa   :  { %s49_s25 = sshll.u32 %s710_s2, 4  ;;  %s581_s26 = smov [#allocation2]   ;;  %s50_s25 = int_to_ptr.hbm [resolvable:$true] %s49_s25 }
   0xb   :  { %s26_s27 = sshll.u32 %s581_s26, 4  ;;  %s582_s3 = smov [#allocation7]   ;;  %s27_s27 = int_to_ptr.vmem [resolvable:$true] %s26_s27 }
   0xc   :  { %32 = dma.hbm_to_vmem [thread:$0]  %s25_s21, 256, %s27_s27, [#allocation3], %s579_s1, %s579_s1, %s580_s22  }
   0xd   :  { %s51_s28 = sshll.u32 %s582_s3, 4  ;;  %s74_s0 = sshll.u32 %s713_s5, 4  ;;  %s52_s28 = int_to_ptr.vmem [resolvable:$true] %s51_s28  ;;  %s75_s0 = int_to_ptr.hbm [resolvable:$true] %s74_s0 }
   0xe   :  { %54 = dma.hbm_to_vmem [thread:$0]  %s50_s25, 32, %s52_s28, [#allocation6]  }
   0xf   :  { %s583_s10 = smov [#allocation10]  }
  0x10   :  { %s76_s11 = sshll.u32 %s583_s10, 4  ;;  %s77_s11 = int_to_ptr.vmem [resolvable:$true] %s76_s11 }
  0x11   :  { %82 = dma.hbm_to_vmem [thread:$0]  %s75_s0, 256, %s77_s11, [#allocation9], %s579_s1, %s579_s1, %s580_s22  }
  0x12   :  { %567 = dma.done.wait [#allocation3], 256  }
  0x13   :  { %568 = vsyncadd [#allocation3], 4294967040 }
  0x14   :  { %569 = dma.done.wait [#allocation6], 64  }
  0x15   :  { %570 = vsyncadd [#allocation6], 4294967232 }
  0x16   :  { %571 = dma.done.wait [#allocation9], 512  }
  0x17   :  { %572 = vsyncadd [#allocation9], 4294966784  ;;  %vm121_vm0 = vcmask 1043456   ;;  %v112_v0 = vld [vmem:[#allocation10 + $0x8] sm:$0xf]  ;;  %v146_v1 = vld [vmem:[#allocation8 + $0x8] sm:$0xff]  ;;  %v207_v28 = vlaneseq }
  0x18   :  { %v111_v2 = vld [vmem:[#allocation10] sm:$0xff]  ;;  %356 = vmatpush.msk.msra.mxu0 %vm121_vm0, %v112_v0  ;;  %360 = vmatpush.msra.mxu2 %v146_v1  ;;  %v145_v3 = vld [vmem:[#allocation8] sm:$0xff]  ;;  %v109_v4 = vld [vmem:[#allocation5] sm:$0x3]  ;;  %vm117_vm1 = vcmask 97280   ;;  %vm151_vm2 = vcmask 130048  }
  0x19   :  { %v659_v5 = vld [vmem:[#allocation2 + $0x8] sm:$0xff]  ;;  %172 = vmatpush.msra.mxu1 %v146_v1  ;;  %v661_v6 = vld [vmem:[#allocation2] sm:$0xff]  ;;  %vm197_vm3 = vcmask 261120   ;;  %v208_v29 = vand.u32 127, %v207_v28  ;;  %v110_v30 = vld [vmem:[#allocation7] sm:$0x3] }
  0x1a   :  { %140 = vmatpush.msra.mxu0 %v111_v2  ;;  %361 = vmatpush.msra.mxu2 %v145_v3  ;;  %v388_v7 = vld [vmem:[%s714_s6] ss:$0 sm:$0xff]  ;;  %vm211_vm4 = vcmask 1041409   ;;  %vm204_vm5 = vcmp.eq.f32.partialorder %v110_v30, 0.0  ;;  %vm215_vm6 = vcmask 58368   ;;  %v584_v42 = vmov 3  }
  0x1b   :  { %357 = vmatmul.msk.f32.vlgmr.msra.gmra.mxu0 %vm117_vm1, %v109_v4  ;;  %359 = vmatmul.msk.f32.vlgmr.msra.gmra.mxu2 %vm151_vm2, %v659_v5  ;;  %v389_v8 = vld [vmem:[%s712_s4] ss:$0 sm:$0xff]  ;;  %v585_v43 = vmov 2   ;;  %v586_v44 = vmov 0   ;;  %v587_v57 = vmov 7   ;;  %v588_v58 = vmov 1  }
  0x1c   :  { %173 = vmatpush.msra.mxu1 %v145_v3  ;;  %v390_v20 = vld [vmem:[%s715_s7] ss:$0 sm:$0xff]  ;;  %382 = vset.pattern.permute.xlu1 %v584_v42  ;;  %s589_s4 = smov [#allocation12]   ;;  %s339_s17 = sshll.u32 %s717_s9, 4  ;;  %v590_v59 = vmov 4   ;;  %v591_v60 = vmov 5   ;;  %s340_s17 = int_to_ptr.hbm [resolvable:$true] %s339_s17 }
  0x1d   :  { %358 = vmatmul.msk.f32.vlgmr.msra.gmra.mxu1 %vm151_vm2, %v661_v6  ;;  %381 = vset.pattern.permute.xlu0 %v585_v43  ;;  %s337_s6 = sshll.u32 %s589_s4, 4  ;;  %v592_v61 = vmov 6   ;;  %v254_v1 = vrot.slane %v661_v6, 1  ;;  %v246_v2 = vrot.slane %v659_v5, 7  ;;  %v263_v3 = vrot.slane %v661_v6, 2  ;;  %s593_s9 = smov [#allocation11]   ;;  %s338_s6 = int_to_ptr.vmem [resolvable:$true] %s337_s6 }
  0x1e   :  { %379 = vset.pattern.permute.xlu2 %v586_v44  ;;  %v264_v4 = vrot.slane %v659_v5, 1  ;;  %v304_v28 = vrot.slane %v659_v5, 5  ;;  %s326_s18 = sshll.u32 %s593_s9, 4  ;;  %s328_s21 = sshll.u32 %s716_s8, 4  ;;  %vm319_vm11 = vcmask 123904   ;;  %s327_s18 = int_to_ptr.vmem [resolvable:$true] %s326_s18  ;;  %s329_s21 = int_to_ptr.hbm [resolvable:$true] %s328_s21 }
  0x98   :  { %v142_v9 = vpop.f32.mrf.mxu0 }
  0x99   :  { %v143_v10 = vadd.f32 %v388_v7, %v142_v9  ;;  %v255_v7 = vsel %vm211_vm4, %v659_v5, %v254_v1  ;;  %v265_v9 = vsel %vm211_vm4, %v264_v4, %v263_v3 }
  0x9a   :  { %v175_v11 = vpop.f32.mrf.mxu1 }
  0x9b   :  { %v182_v12 = vrot.slane %v143_v10, 1  ;;  %v183_v13 = vperm.slane %v143_v10, 0  ;;  %v176_v14 = vadd.f32 %v389_v8, %v175_v11 }
  0x9d   :  { %v187_v15 = vadd.f32 %v183_v13, %v176_v14  ;;  %v184_v17 = vperm.slane %v182_v12, 0  ;;  %v273_v12 = vrot.slane %v661_v6, 3  ;;  %v274_v13 = vrot.slane %v659_v5, 2 }
  0x9e   :  { %v178_v16 = vpop.f32.mrf.mxu2 }
  0x9f   :  { %391 = vtanh.f32 %v187_v15  ;;  %v179_v18 = vadd.f32 %v389_v8, %v178_v16  ;;  %v247_v8 = vsel %vm211_vm4, %v246_v2, %v661_v6 }
  0xa1   :  { %v188_v19 = vadd.f32 %v184_v17, %v179_v18  ;;  %v283_v18 = vrot.slane %v661_v6, 4 }
  0xa3   :  { %393 = vtanh.f32 %v188_v19  ;;  %v284_v19 = vrot.slane %v659_v5, 3 }
  0xa5   :  { %v392_v21 = vpop.eup %391 }
  0xa6   :  { %v195_v22 = vmul.f32 %v392_v21, %v390_v20 }
  0xa8   :  { %v198_v23 = vsel %vm197_vm3, %v195_v22, 0.0 }
  0xa9   :  { %v394_v24 = vpop.eup %393  ;;  %199 = vadd.xlane.f32.xlu0 %v198_v23  ;;  %v285_v23 = vsel %vm211_vm4, %v284_v19, %v283_v18 }
  0xaa   :  { %v196_v25 = vmul.f32 %v394_v24, %v390_v20  ;;  %v275_v20 = vsel %vm211_vm4, %v274_v13, %v273_v12 }
  0xac   :  { %v201_v26 = vsel %vm197_vm3, %v196_v25, 0.0  ;;  %v293_v25 = vrot.slane %v661_v6, 5 }
  0xb1   :  { %202 = vadd.xlane.f32.xlu0 %v201_v26  ;;  %v294_v26 = vrot.slane %v659_v5, 4 }
 0x11c   :  { %v200_v27 = vpop.xlane.xlu0 %199 }
 0x11d   :  { %v209_v32 = vperm.slane %v200_v27, %v208_v29  ;;  %v303_v27 = vrot.slane %v661_v6, 6 }
 0x124   :  { %v203_v31 = vpop.xlane.xlu0 %202 }
 0x125   :  { %v210_v33 = vperm.slane %v203_v31, %v208_v29 }
 0x127   :  { %v212_v34 = vsel %vm211_vm4, %v210_v33, %v209_v32  ;;  %v295_v32 = vsel %vm211_vm4, %v294_v26, %v293_v25  ;;  %v305_v33 = vsel %vm211_vm4, %v304_v28, %v303_v27 }
 0x128   :  { %v214_v35 = vsel %vm204_vm5, -1e+09, %v212_v34  ;;  %v313_v34 = vrot.slane %v661_v6, 7 }
 0x129   :  { %v216_v36 = vsel %vm215_vm6, %v214_v35, -inf }
 0x12a   :  { %217 = vmax.xlane.f32.xlu1 %v216_v36 }
 0x19d   :  { %v218_v37 = vpop.xlane.xlu1 %217 }
 0x19e   :  { %v219_v38 = vsub.f32 %v214_v35, %v218_v37  ;;  %v314_v35 = vrot.slane %v659_v5, 6 }
 0x1a0   :  { %v220_v39 = vmul.f32 1.442695, %v219_v38 }
 0x1a2   :  { %395 = vpow2.f32 %v220_v39  ;;  %v315_v39 = vsel %vm211_vm4, %v314_v35, %v313_v34 }
 0x1a8   :  { %v396_v40 = vpop.eup %395 }
 0x1a9   :  { %v222_v41 = vsel %vm215_vm6, %v396_v40, 0.0 }
 0x1aa   :  { %223 = vadd.xlane.f32.xlu1 %v222_v41 }
 0x21d   :  { %v224_v45 = vpop.xlane.xlu1 %223 }
 0x21e   :  { %397 = vrcp.f32 %v224_v45  ;;  %v236_v49 = vand.u32 2147483648, %v224_v45  ;;  %v234_v51 = vand.u32 2147483647, %v224_v45  ;;  %vm230_vm8 = vweird.f32 %v224_v45 }
 0x220   :  { %v237_v53 = vor.u32 1.1754944e-38, %v236_v49  ;;  %vm235_vm10 = vcmp.eq.f32.partialorder %v234_v51, 8.507059e+37 }
 0x224   :  { %v398_v46 = vpop.eup %397 }
 0x225   :  { %v226_v47 = vmul.f32 %v398_v46, %v224_v45  ;;  %vm231_vm7 = vweird.f32 %v398_v46 }
 0x226   :  { %vm232_vm9 = vmor %vm230_vm8, %vm231_vm7 }
 0x227   :  { %v227_v48 = vsub.f32 1.0, %v226_v47 }
 0x229   :  { %v228_v50 = vmul.f32 %v398_v46, %v227_v48 }
 0x22b   :  { %v229_v52 = vadd.f32 %v398_v46, %v228_v50 }
 0x22d   :  { %v233_v54 = vsel %vm232_vm9, %v398_v46, %v229_v52 }
 0x22e   :  { %v238_v55 = vsel %vm235_vm10, %v237_v53, %v233_v54 }
 0x22f   :  { %v239_v56 = vmul.f32 %v396_v40, %v238_v55 }
 0x231   :  { %240 = vst.msk [vmem:[#allocation12] sm:$0x3] %vm215_vm6, %v239_v56  ;;  %270 = vperm.xlu1 %382, %v239_v56   ;;  %260 = vperm.xlu0 %381, %v239_v56  }
 0x232   :  { %243 = vperm.xlu2 %379, %v239_v56   ;;  %342 = dma.vmem_to_hbm [thread:$0]  %s338_s6, 32, %s340_s17, [#allocation13]  }
 0x239   :  { %387 = vset.pattern.permute.xlu0 %v587_v57 }
 0x23a   :  { %380 = vset.pattern.permute.xlu2 %v588_v58 }
 0x23b   :  { %251 = vperm.xlu2 %380, %v239_v56  }
 0x243   :  { %383 = vset.pattern.permute.xlu2 %v590_v59 }
 0x244   :  { %280 = vperm.xlu2 %383, %v239_v56  }
 0x24c   :  { %384 = vset.pattern.permute.xlu2 %v591_v60 }
 0x24d   :  { %290 = vperm.xlu2 %384, %v239_v56  }
 0x255   :  { %385 = vset.pattern.permute.xlu2 %v592_v61 }
 0x256   :  { %300 = vperm.xlu2 %385, %v239_v56  }
 0x25e   :  { %386 = vset.pattern.permute.xlu2 %v587_v57 }
 0x25f   :  { %310 = vperm.xlu2 %386, %v239_v56  }
 0x28c   :  { %v244_v62 = vpop.permute.xlu2 %243 }
 0x28d   :  { %v249_v15 = vmul.f32 %v247_v8, %v244_v62 }
 0x295   :  { %v252_v63 = vpop.permute.xlu2 %251 }
 0x296   :  { %v257_v11 = vmul.f32 %v255_v7, %v252_v63 }
 0x298   :  { %v258_v17 = vadd.f32 %v257_v11, %v249_v15 }
 0x29e   :  { %v281_v0 = vpop.permute.xlu2 %280 }
 0x29f   :  { %v287_v31 = vmul.f32 %v285_v23, %v281_v0 }
 0x2a3   :  { %v261_v10 = vpop.permute.xlu0 %260  ;;  %v271_v21 = vpop.permute.xlu1 %270 }
 0x2a4   :  { %v267_v16 = vmul.f32 %v265_v9, %v261_v10  ;;  %v277_v24 = vmul.f32 %v275_v20, %v271_v21 }
 0x2a6   :  { %v268_v22 = vadd.f32 %v267_v16, %v258_v17 }
 0x2a7   :  { %v291_v14 = vpop.permute.xlu2 %290 }
 0x2a8   :  { %v278_v29 = vadd.f32 %v277_v24, %v268_v22  ;;  %v297_v37 = vmul.f32 %v295_v32, %v291_v14 }
 0x2aa   :  { %v288_v36 = vadd.f32 %v287_v31, %v278_v29 }
 0x2ac   :  { %v298_v40 = vadd.f32 %v297_v37, %v288_v36 }
 0x2b0   :  { %v301_v30 = vpop.permute.xlu2 %300 }
 0x2b1   :  { %v307_v38 = vmul.f32 %v305_v33, %v301_v30 }
 0x2b3   :  { %v308_v42 = vadd.f32 %v307_v38, %v298_v40 }
 0x2b9   :  { %v311_v41 = vpop.permute.xlu2 %310 }
 0x2ba   :  { %v317_v43 = vmul.f32 %v315_v39, %v311_v41 }
 0x2bc   :  { %v318_v44 = vadd.f32 %v317_v43, %v308_v42 }
 0x2be   :  { %320 = vst.msk [vmem:[#allocation11] sm:$0x3] %vm319_vm11, %v318_v44 }
 0x2bf   :  { %331 = dma.vmem_to_hbm [thread:$0]  %s327_s18, 32, %s329_s21, [#allocation4]  }
 0x2c0   :  { %573 = dma.done.wait [#allocation4], 32  }
 0x2c1   :  { %574 = vsyncadd [#allocation4], 4294967264 }
 0x2c2   :  { %575 = dma.done.wait [#allocation13], 32  }
 0x2c3   :  { %576 = vsyncadd [#allocation13], 4294967264 }
 0x2c4   :  { %351 = vsyncpa [#allocation3], 1 }
 0x2c5   :  { %352 = vsyncpa [#allocation6], 1 }
 0x2c6   :  { %353 = vsyncpa [#allocation9], 1 }
 0x2c7   :  { %354 = vsyncpa [#allocation4], 1 }
 0x2c8   :  { %355 = vsyncpa [#allocation13], 1 }

</bundles_post_ra>
